<compile_context>
chip_gen: v6e
topology: v6e:2x2x1
jax: 0.10.0
libtpu: 0.0.40
codegen_flags: <defaults>
</compile_context>

<pallas_src>
import jax
import jax.numpy as jnp
from jax.experimental import pallas as pl
from jax.experimental.pallas import tpu as pltpu


def _round_up(x, m):
    return (x + m - 1) // m * m


def _fused_bottom_kernel(xu_ref, xi_ref, xj_ref, w1_ref, b1_ref, w2_ref, b2_ref,
                         ou_ref, oi_ref, oj_ref):
    """Apply all 6 packed bottom MLPs to one row-tile of each embedding batch.

    x*_ref: (T, D)     bf16 — user / pos-item / neg-item embedding rows
    w1_ref: (D, H1P)   bf16 — 6 nets' first-layer weights, concat + zero pad
    b1_ref: (1, H1P)   f32
    w2_ref: (H1P, H2P) bf16 — block-diagonal second-layer weights + zero pad
    b2_ref: (1, H2P)   f32
    o*_ref: (T, H2P)   f32 — lane-dense outputs (H2P is a multiple of 128)
    """
    w1 = w1_ref[...]
    b1 = b1_ref[...]
    w2 = w2_ref[...]
    b2 = b2_ref[...]

    def one(x_ref, o_ref):
        # MXU: bf16 x bf16 -> f32 accumulate; bias/ReLU in f32 on the VPU.
        # Dropout(p=0.1) == identity in eval mode.
        h = jnp.dot(x_ref[...], w1, preferred_element_type=jnp.float32) + b1
        h = jnp.maximum(h, 0.0)
        y = jnp.dot(h.astype(w2.dtype), w2,
                    preferred_element_type=jnp.float32) + b2
        o_ref[...] = y

    one(xu_ref, ou_ref)
    one(xi_ref, oi_ref)
    one(xj_ref, oj_ref)


def bottom_networks(emb_u, emb_i, emb_j, w1p, b1p, w2p, b2p):
    """All 6 bottom MLPs applied to all 3 embedding batches in one pallas_call.

    Inputs: three (B, D) f32 batches (no host-side concat).
    Returns three (B, H2P) f32 arrays whose columns are [net0 | ... | net5 | pad].
    """
    B, D = emb_u.shape
    H1P = w1p.shape[-1]
    H2P = w2p.shape[-1]

    # Rows: pad to a sublane multiple; tile over a parallel row grid only when
    # the batch is big enough for tiling / megacore sharding to matter.
    B_pad = _round_up(max(B, 8), 8)
    if B_pad <= 512:
        tile = B_pad                       # grid = (1,)
    else:
        tile = 256
        B_pad = _round_up(B_pad, tile)
    grid = (B_pad // tile,)

    def prep(x):
        if x.shape[0] != B_pad:
            x = jnp.pad(x, ((0, B_pad - x.shape[0]), (0, 0)))
        return x.astype(jnp.bfloat16)

    xu, xi, xj = prep(emb_u), prep(emb_i), prep(emb_j)

    x_spec = pl.BlockSpec((tile, D), lambda i: (i, 0),
                          memory_space=pltpu.MemorySpace.VMEM)
    o_spec = pl.BlockSpec((tile, H2P), lambda i: (i, 0),
                          memory_space=pltpu.MemorySpace.VMEM)

    def resident(shape):  # weights / biases stay resident across row tiles
        return pl.BlockSpec(shape, lambda i: (0, 0),
                            memory_space=pltpu.MemorySpace.VMEM)

    flops = 2 * 3 * B_pad * (D * H1P + H1P * H2P)
    bytes_accessed = (3 * B_pad * D * 2            # bf16 activations in
                      + D * H1P * 2 + H1P * 4      # w1 (bf16) + b1 (f32)
                      + H1P * H2P * 2 + H2P * 4    # w2 (bf16) + b2 (f32)
                      + 3 * B_pad * H2P * 4)       # f32 activations out
    # Per-block VMEM demand (with double-buffering headroom); keep the scoped
    # limit explicit so v5e's 16 MiB default never bites and v7x's 64 MiB
    # physical ceiling is respected.
    block_bytes = (3 * tile * D * 2 + 3 * tile * H2P * 4
                   + D * H1P * 2 + H1P * 4 + H1P * H2P * 2 + H2P * 4)
    vmem_limit = int(min(64 << 20, max(32 << 20, 4 * block_bytes)))

    yu, yi, yj = pl.pallas_call(
        _fused_bottom_kernel,
        grid=grid,
        in_specs=[x_spec, x_spec, x_spec,
                  resident((D, H1P)), resident((1, H1P)),
                  resident((H1P, H2P)), resident((1, H2P))],
        out_specs=[o_spec, o_spec, o_spec],
        out_shape=[jax.ShapeDtypeStruct((B_pad, H2P), jnp.float32)] * 3,
        compiler_params=pltpu.CompilerParams(
            dimension_semantics=("parallel",),
            vmem_limit_bytes=vmem_limit),
        cost_estimate=pl.CostEstimate(flops=flops, transcendentals=0,
                                      bytes_accessed=bytes_accessed),
    )(xu, xi, xj, w1p, b1p, w2p, b2p)

    return yu[:B], yi[:B], yj[:B]


def init_params(key, user_count, item_count, dim):
    """Parameters matching MBA.__init__ (embeddings + 6 bottom networks),
    with the 6 networks' weights packed once into MXU/lane-friendly bf16 slabs."""
    D, D2, D4 = dim, dim // 2, dim // 4
    n_nets = 6
    H1, H2 = n_nets * D2, n_nets * D4
    H1P, H2P = _round_up(H1, 128), _round_up(H2, 128)

    keys = jax.random.split(key, 2 + 4 * n_nets)
    params = {
        "user_emb": 0.01 * jax.random.normal(keys[0], (user_count, D), jnp.float32),
        "item_emb": 0.01 * jax.random.normal(keys[1], (item_count, D), jnp.float32),
    }

    # PyTorch nn.Linear stores W as (out, in); we store (in, out) so the
    # kernel does x @ W directly (y = x @ W + b == x @ W_pt.T + b).
    w1p = jnp.zeros((D, H1P), jnp.float32)
    b1p = jnp.zeros((1, H1P), jnp.float32)
    w2p = jnp.zeros((H1P, H2P), jnp.float32)   # block-diagonal layout
    b2p = jnp.zeros((1, H2P), jnp.float32)
    bound1 = 1.0 / float(D) ** 0.5
    bound2 = 1.0 / float(D2) ** 0.5
    for n in range(n_nets):
        k = keys[2 + 4 * n: 2 + 4 * (n + 1)]
        w1 = jax.random.uniform(k[0], (D, D2), jnp.float32, -bound1, bound1)
        b1 = jax.random.uniform(k[1], (D2,), jnp.float32, -bound1, bound1)
        w2 = jax.random.uniform(k[2], (D2, D4), jnp.float32, -bound2, bound2)
        b2 = jax.random.uniform(k[3], (D4,), jnp.float32, -bound2, bound2)
        w1p = w1p.at[:, n * D2:(n + 1) * D2].set(w1)
        b1p = b1p.at[0, n * D2:(n + 1) * D2].set(b1)
        w2p = w2p.at[n * D2:(n + 1) * D2, n * D4:(n + 1) * D4].set(w2)
        b2p = b2p.at[0, n * D4:(n + 1) * D4].set(b2)

    params["w1p"] = w1p.astype(jnp.bfloat16)   # (D, H1P)   bf16
    params["b1p"] = b1p                        # (1, H1P)   f32
    params["w2p"] = w2p.astype(jnp.bfloat16)   # (H1P, H2P) bf16
    params["b2p"] = b2p                        # (1, H2P)   f32
    return params


@jax.jit
def mba_forward(params, user, p_item, n_item, bu, u_vec, bi, i_vec):
    """Mirrors MBA.forward(mini_b) in eval mode.

    Returns (H_u[:4], H_i[:4], H_j[:4], H_u[4][bu], u_vec,
             cat([H_i[5], H_j[5]], 0)[bi], i_vec),
    where each H_*[k] has shape (B, dim//4).
    """
    D = params["user_emb"].shape[-1]
    D4 = D // 4

    emb_u = jnp.take(params["user_emb"], user, axis=0)     # (B, D)
    emb_i = jnp.take(params["item_emb"], p_item, axis=0)   # (B, D)
    emb_j = jnp.take(params["item_emb"], n_item, axis=0)   # (B, D)

    yu, yi, yj = bottom_networks(emb_u, emb_i, emb_j,
                                 params["w1p"], params["b1p"],
                                 params["w2p"], params["b2p"])   # 3 x (B, H2P)

    # Lazy 2-D column slices (no (6,3,B,D4) transpose materialization); XLA
    # fuses them into the downstream gathers / heads.
    def net(y, n):
        return y[:, n * D4:(n + 1) * D4]

    H_u = tuple(net(yu, n) for n in range(4))
    H_i = tuple(net(yi, n) for n in range(4))
    H_j = tuple(net(yj, n) for n in range(4))

    h_u_E = net(yu, 4)[bu]                                        # (len(bu), D4)
    h_i_sub = jnp.concatenate([net(yi, 5), net(yj, 5)], axis=0)[bi]  # (len(bi), D4)

    return (H_u, H_i, H_j, h_u_E, u_vec, h_i_sub, i_vec)


if __name__ == "__main__":
    # Small, deterministic configuration.
    user_count, item_count, dim = 12, 10, 32
    B = 8  # mini-batch size
    D2, D4 = dim // 2, dim // 4

    key = jax.random.PRNGKey(0)
    k_param, k_u, k_pi, k_ni, k_uvec, k_ivec = jax.random.split(key, 6)

    params = init_params(k_param, user_count, item_count, dim)

    user = jax.random.randint(k_u, (B,), 0, user_count)
    p_item = jax.random.randint(k_pi, (B,), 0, item_count)
    n_item = jax.random.randint(k_ni, (B,), 0, item_count)

    bu = jnp.array([0, 2, 4, 5], dtype=jnp.int32)            # indices into batch
    u_vec = jax.random.uniform(k_uvec, (4, item_count), jnp.float32)
    bi = jnp.array([0, 1, 3, 7, 9, 15], dtype=jnp.int32)     # indices into 2*B
    i_vec = jax.random.uniform(k_ivec, (6, user_count), jnp.float32)

    out = jax.block_until_ready(
        mba_forward(params, user, p_item, n_item, bu, u_vec, bi, i_vec))
    H_u, H_i, H_j, h_u_E, u_vec_o, h_i_sub, i_vec_o = out

    # Shape sanity.
    assert all(h.shape == (B, D4) for h in H_u + H_i + H_j)
    assert h_u_E.shape == (bu.shape[0], D4)
    assert h_i_sub.shape == (bi.shape[0], D4)
    assert u_vec_o.shape == u_vec.shape
    assert i_vec_o.shape == i_vec.shape

    # Numerical check against a plain-JAX reference built from the SAME packed
    # bf16 weights. Covers all six networks, including nets 4 and 5 that feed
    # h_u_E / h_i_sub.
    emb_u = jnp.take(params["user_emb"], user, axis=0)
    emb_i = jnp.take(params["item_emb"], p_item, axis=0)
    emb_j = jnp.take(params["item_emb"], n_item, axis=0)

    def ref_net(x, n):
        w1 = params["w1p"][:, n * D2:(n + 1) * D2]
        b1 = params["b1p"][0, n * D2:(n + 1) * D2]
        w2 = params["w2p"][n * D2:(n + 1) * D2, n * D4:(n + 1) * D4]
        b2 = params["b2p"][0, n * D4:(n + 1) * D4]
        h = jnp.dot(x.astype(jnp.bfloat16), w1,
                    preferred_element_type=jnp.float32) + b1
        h = jnp.maximum(h, 0.0)
        return jnp.dot(h.astype(jnp.bfloat16), w2,
                       preferred_element_type=jnp.float32) + b2

    tol = dict(atol=1e-3, rtol=1e-3)
    for n in range(4):
        assert jnp.allclose(H_u[n], ref_net(emb_u, n), **tol), f"H_u[{n}] mismatch"
        assert jnp.allclose(H_i[n], ref_net(emb_i, n), **tol), f"H_i[{n}] mismatch"
        assert jnp.allclose(H_j[n], ref_net(emb_j, n), **tol), f"H_j[{n}] mismatch"
    assert jnp.allclose(h_u_E, ref_net(emb_u, 4)[bu], **tol), "h_u_E mismatch"
    ref_sub = jnp.concatenate([ref_net(emb_i, 5), ref_net(emb_j, 5)], axis=0)[bi]
    assert jnp.allclose(h_i_sub, ref_sub, **tol), "h_i_sub mismatch"

    print("KERNEL_OK")
</pallas_src>

<mosaic_0001>
module attributes {stable_mosaic.version = 11 : i64} {
  func.func @_fused_bottom_kernel(%arg0: i32, %arg1: memref<8x32xbf16, #tpu.memory_space<vmem>>, %arg2: memref<8x32xbf16, #tpu.memory_space<vmem>>, %arg3: memref<8x32xbf16, #tpu.memory_space<vmem>>, %arg4: memref<32x128xbf16, #tpu.memory_space<vmem>>, %arg5: memref<1x128xf32, #tpu.memory_space<vmem>>, %arg6: memref<128x128xbf16, #tpu.memory_space<vmem>>, %arg7: memref<1x128xf32, #tpu.memory_space<vmem>>, %arg8: memref<8x128xf32, #tpu.memory_space<vmem>>, %arg9: memref<8x128xf32, #tpu.memory_space<vmem>>, %arg10: memref<8x128xf32, #tpu.memory_space<vmem>>) attributes {dimension_semantics = [#tpu.dimension_semantics<parallel>], iteration_bounds = array<i64: 1>, scalar_prefetch = 0 : i64, scratch_operands = 0 : i64, tpu.core_type = #tpu.core_type<tc>, window_params = [{transform_indices = @transform_0, window_bounds = array<i64: 8, 32>}, {transform_indices = @transform_1, window_bounds = array<i64: 8, 32>}, {transform_indices = @transform_2, window_bounds = array<i64: 8, 32>}, {pipeline_mode = #tpu.pipeline_mode<synchronous>, transform_indices = @transform_3, window_bounds = array<i64: 32, 128>}, {pipeline_mode = #tpu.pipeline_mode<synchronous>, transform_indices = @transform_4, window_bounds = array<i64: 1, 128>}, {pipeline_mode = #tpu.pipeline_mode<synchronous>, transform_indices = @transform_5, window_bounds = array<i64: 128, 128>}, {pipeline_mode = #tpu.pipeline_mode<synchronous>, transform_indices = @transform_6, window_bounds = array<i64: 1, 128>}, {transform_indices = @transform_7, window_bounds = array<i64: 8, 128>}, {transform_indices = @transform_8, window_bounds = array<i64: 8, 128>}, {transform_indices = @transform_9, window_bounds = array<i64: 8, 128>}]} {
    %c0 = arith.constant 0 : index
    %c0_0 = arith.constant 0 : index
    %0 = vector.load %arg4[%c0, %c0_0] : memref<32x128xbf16, #tpu.memory_space<vmem>>, vector<32x128xbf16>
    %c0_1 = arith.constant 0 : index
    %c0_2 = arith.constant 0 : index
    %1 = vector.load %arg5[%c0_1, %c0_2] : memref<1x128xf32, #tpu.memory_space<vmem>>, vector<1x128xf32>
    %c0_3 = arith.constant 0 : index
    %c0_4 = arith.constant 0 : index
    %2 = vector.load %arg6[%c0_3, %c0_4] : memref<128x128xbf16, #tpu.memory_space<vmem>>, vector<128x128xbf16>
    %c0_5 = arith.constant 0 : index
    %c0_6 = arith.constant 0 : index
    %3 = vector.load %arg7[%c0_5, %c0_6] : memref<1x128xf32, #tpu.memory_space<vmem>>, vector<1x128xf32>
    %c0_7 = arith.constant 0 : index
    %c0_8 = arith.constant 0 : index
    %4 = vector.load %arg1[%c0_7, %c0_8] : memref<8x32xbf16, #tpu.memory_space<vmem>>, vector<8x32xbf16>
    %cst = arith.constant dense<0.000000e+00> : vector<8x128xf32>
    %5 = tpu.matmul %4, %0, %cst {dimension_numbers = #tpu.dot_dimension_numbers<[1], [0], [0], [1], [0, 0, 1, 1], [], []>} : vector<8x32xbf16>, vector<32x128xbf16>, vector<8x128xf32> -> vector<8x128xf32>
    %6 = vector.broadcast %1 : vector<1x128xf32> to vector<8x128xf32>
    %7 = arith.addf %5, %6 : vector<8x128xf32>
    %cst_9 = arith.constant 0.000000e+00 : f32
    %8 = vector.broadcast %cst_9 : f32 to vector<8x128xf32>
    %9 = arith.maximumf %7, %8 : vector<8x128xf32>
    %10 = arith.truncf %9 : vector<8x128xf32> to vector<8x128xbf16>
    %cst_10 = arith.constant dense<0.000000e+00> : vector<8x128xf32>
    %11 = tpu.matmul %10, %2, %cst_10 {dimension_numbers = #tpu.dot_dimension_numbers<[1], [0], [0], [1], [0, 0, 1, 1], [], []>} : vector<8x128xbf16>, vector<128x128xbf16>, vector<8x128xf32> -> vector<8x128xf32>
    %12 = vector.broadcast %3 : vector<1x128xf32> to vector<8x128xf32>
    %13 = arith.addf %11, %12 : vector<8x128xf32>
    %c0_11 = arith.constant 0 : index
    %c0_12 = arith.constant 0 : index
    %14 = vector.load %arg8[%c0_11, %c0_12] : memref<8x128xf32, #tpu.memory_space<vmem>>, vector<8x128xf32>
    tpu.vector_store %arg8[%c0_11, %c0_12], %13 {strides = array<i32>} : memref<8x128xf32, #tpu.memory_space<vmem>>, vector<8x128xf32>,
    %c0_13 = arith.constant 0 : index
    %c0_14 = arith.constant 0 : index
    %15 = vector.load %arg2[%c0_13, %c0_14] : memref<8x32xbf16, #tpu.memory_space<vmem>>, vector<8x32xbf16>
    %cst_15 = arith.constant dense<0.000000e+00> : vector<8x128xf32>
    %16 = tpu.matmul %15, %0, %cst_15 {dimension_numbers = #tpu.dot_dimension_numbers<[1], [0], [0], [1], [0, 0, 1, 1], [], []>} : vector<8x32xbf16>, vector<32x128xbf16>, vector<8x128xf32> -> vector<8x128xf32>
    %17 = vector.broadcast %1 : vector<1x128xf32> to vector<8x128xf32>
    %18 = arith.addf %16, %17 : vector<8x128xf32>
    %cst_16 = arith.constant 0.000000e+00 : f32
    %19 = vector.broadcast %cst_16 : f32 to vector<8x128xf32>
    %20 = arith.maximumf %18, %19 : vector<8x128xf32>
    %21 = arith.truncf %20 : vector<8x128xf32> to vector<8x128xbf16>
    %cst_17 = arith.constant dense<0.000000e+00> : vector<8x128xf32>
    %22 = tpu.matmul %21, %2, %cst_17 {dimension_numbers = #tpu.dot_dimension_numbers<[1], [0], [0], [1], [0, 0, 1, 1], [], []>} : vector<8x128xbf16>, vector<128x128xbf16>, vector<8x128xf32> -> vector<8x128xf32>
    %23 = vector.broadcast %3 : vector<1x128xf32> to vector<8x128xf32>
    %24 = arith.addf %22, %23 : vector<8x128xf32>
    %c0_18 = arith.constant 0 : index
    %c0_19 = arith.constant 0 : index
    %25 = vector.load %arg9[%c0_18, %c0_19] : memref<8x128xf32, #tpu.memory_space<vmem>>, vector<8x128xf32>
    tpu.vector_store %arg9[%c0_18, %c0_19], %24 {strides = array<i32>} : memref<8x128xf32, #tpu.memory_space<vmem>>, vector<8x128xf32>,
    %c0_20 = arith.constant 0 : index
    %c0_21 = arith.constant 0 : index
    %26 = vector.load %arg3[%c0_20, %c0_21] : memref<8x32xbf16, #tpu.memory_space<vmem>>, vector<8x32xbf16>
    %cst_22 = arith.constant dense<0.000000e+00> : vector<8x128xf32>
    %27 = tpu.matmul %26, %0, %cst_22 {dimension_numbers = #tpu.dot_dimension_numbers<[1], [0], [0], [1], [0, 0, 1, 1], [], []>} : vector<8x32xbf16>, vector<32x128xbf16>, vector<8x128xf32> -> vector<8x128xf32>
    %28 = vector.broadcast %1 : vector<1x128xf32> to vector<8x128xf32>
    %29 = arith.addf %27, %28 : vector<8x128xf32>
    %cst_23 = arith.constant 0.000000e+00 : f32
    %30 = vector.broadcast %cst_23 : f32 to vector<8x128xf32>
    %31 = arith.maximumf %29, %30 : vector<8x128xf32>
    %32 = arith.truncf %31 : vector<8x128xf32> to vector<8x128xbf16>
    %cst_24 = arith.constant dense<0.000000e+00> : vector<8x128xf32>
    %33 = tpu.matmul %32, %2, %cst_24 {dimension_numbers = #tpu.dot_dimension_numbers<[1], [0], [0], [1], [0, 0, 1, 1], [], []>} : vector<8x128xbf16>, vector<128x128xbf16>, vector<8x128xf32> -> vector<8x128xf32>
    %34 = vector.broadcast %3 : vector<1x128xf32> to vector<8x128xf32>
    %35 = arith.addf %33, %34 : vector<8x128xf32>
    %c0_25 = arith.constant 0 : index
    %c0_26 = arith.constant 0 : index
    %36 = vector.load %arg10[%c0_25, %c0_26] : memref<8x128xf32, #tpu.memory_space<vmem>>, vector<8x128xf32>
    tpu.vector_store %arg10[%c0_25, %c0_26], %35 {strides = array<i32>} : memref<8x128xf32, #tpu.memory_space<vmem>>, vector<8x128xf32>,
    return
  }
  func.func @transform_0(%arg0: i32) -> (i32, i32) {
    %c0_i32 = arith.constant 0 : i32
    %c0_i32_0 = arith.constant 0 : i32
    return %arg0, %c0_i32 : i32, i32
  }
  func.func @transform_1(%arg0: i32) -> (i32, i32) {
    %c0_i32 = arith.constant 0 : i32
    %c0_i32_0 = arith.constant 0 : i32
    return %arg0, %c0_i32 : i32, i32
  }
  func.func @transform_2(%arg0: i32) -> (i32, i32) {
    %c0_i32 = arith.constant 0 : i32
    %c0_i32_0 = arith.constant 0 : i32
    return %arg0, %c0_i32 : i32, i32
  }
  func.func @transform_3(%arg0: i32) -> (i32, i32) {
    %c0_i32 = arith.constant 0 : i32
    %c0_i32_0 = arith.constant 0 : i32
    %c0_i32_1 = arith.constant 0 : i32
    return %c0_i32, %c0_i32_0 : i32, i32
  }
  func.func @transform_4(%arg0: i32) -> (i32, i32) {
    %c0_i32 = arith.constant 0 : i32
    %c0_i32_0 = arith.constant 0 : i32
    %c0_i32_1 = arith.constant 0 : i32
    return %c0_i32, %c0_i32_0 : i32, i32
  }
  func.func @transform_5(%arg0: i32) -> (i32, i32) {
    %c0_i32 = arith.constant 0 : i32
    %c0_i32_0 = arith.constant 0 : i32
    %c0_i32_1 = arith.constant 0 : i32
    return %c0_i32, %c0_i32_0 : i32, i32
  }
  func.func @transform_6(%arg0: i32) -> (i32, i32) {
    %c0_i32 = arith.constant 0 : i32
    %c0_i32_0 = arith.constant 0 : i32
    %c0_i32_1 = arith.constant 0 : i32
    return %c0_i32, %c0_i32_0 : i32, i32
  }
  func.func @transform_7(%arg0: i32) -> (i32, i32) {
    %c0_i32 = arith.constant 0 : i32
    %c0_i32_0 = arith.constant 0 : i32
    return %arg0, %c0_i32 : i32, i32
  }
  func.func @transform_8(%arg0: i32) -> (i32, i32) {
    %c0_i32 = arith.constant 0 : i32
    %c0_i32_0 = arith.constant 0 : i32
    return %arg0, %c0_i32 : i32, i32
  }
  func.func @transform_9(%arg0: i32) -> (i32, i32) {
    %c0_i32 = arith.constant 0 : i32
    %c0_i32_0 = arith.constant 0 : i32
    return %arg0, %c0_i32 : i32, i32
  }
}

</mosaic_0001>

<bundles_post_ra>
// kernel: mba_forward.1
= control target key start
LH: loop header
LB: loop body
LE: loop exit
PB: predicated region body
PF: predicated region fallthrough
CT: control target
= control target key end

     0   :  { %v545_v0 = vmov 0.0   ;;  %vm546_vm0 = vmmov 0   ;;  %vm71_vm1 = vcmask 261120   ;;  %s731_s3 = inlined_call_operand.vmem [shape: bf16[32,128], index: 3, kind: input, shape index: {}]   ;;  %s732_s5 = inlined_call_operand.vmem [shape: bf16[128,128], index: 5, kind: input, shape index: {}]   ;;  %s733_s0 = inlined_call_operand.vmem [shape: bf16[8,32], index: 0, kind: input, shape index: {}]   ;;  %s734_s1 = inlined_call_operand.vmem [shape: bf16[8,32], index: 1, kind: input, shape index: {}]   ;;  %s735_s4 = inlined_call_operand.vmem [shape: f32[1,128], index: 4, kind: input, shape index: {}]   ;;  %s736_s2 = inlined_call_operand.vmem [shape: bf16[8,32], index: 2, kind: input, shape index: {}]   ;;  %s737_s6 = inlined_call_operand.vmem [shape: f32[1,128], index: 6, kind: input, shape index: {}]   ;;  %s738_s7 = inlined_call_operand.vmem [shape: f32[8,128], index: 7, kind: output, shape index: {0}]   ;;  %s739_s8 = inlined_call_operand.vmem [shape: f32[8,128], index: 8, kind: output, shape index: {1}]   ;;  %s740_s9 = inlined_call_operand.vmem [shape: f32[8,128], index: 9, kind: output, shape index: {2}]  }
   0x1   :  { %449 = vmatprep.subr.bf16.mxu0 %v545_v0  ;;  %v601_v1 = vld [vmem:[%s731_s3 + $0x8] sm:$0xff]   ;;  %453 = vmatprep.mubr.msk.bf16.mxu0 %vm546_vm0, %v545_v0  ;;  %v612_v2 = vld [vmem:[%s731_s3] sm:$0xff]   ;;  %v618_v3 = vld [vmem:[%s732_s5 + $0x38] sm:$0xff]  }
   0x2   :  { %457 = vmatprep.subr.bf16.mxu1 %v545_v0  ;;  %473 = vmatprep.mubr.msk.bf16.mxu1 %vm546_vm0, %v545_v0  ;;  %v624_v4 = vld [vmem:[%s732_s5 + $0x30] sm:$0xff]   ;;  %v52_v5 = vld [vmem:[%s733_s0] sm:$0xf]  ;;  %v635_v6 = vld [vmem:[%s732_s5 + $0x28] sm:$0xff]  }
   0x3   :  { %450 = vmatpush3.bf16.msra.mxu0 %v601_v1  ;;  %458 = vmatpush3.bf16.msra.mxu1 %v618_v3  ;;  %v648_v7 = vld [vmem:[%s732_s5 + $0x20] sm:$0xff]   ;;  %v661_v9 = vld [vmem:[%s732_s5 + $0x18] sm:$0xff]   ;;  %v542_v10 = vld [vmem:[%s732_s5 + $0x10] sm:$0xff]  }
   0x4   :  { %451 = vmatprep.subr.bf16.mxu0 %v545_v0  ;;  %459 = vmatprep.subr.bf16.mxu1 %v545_v0  ;;  %v212_v8 = vld [vmem:[%s734_s1] sm:$0xf]  ;;  %v543_v11 = vld [vmem:[%s732_s5 + $0x8] sm:$0xff]  }
   0x5   :  { %v544_v12 = vld [vmem:[%s732_s5] sm:$0xff]  }
   0x6   :  { %v398_v13 = vld [vmem:[%s735_s4] ss:$0 sm:$0xff] }
   0x7   :  { %452 = vmatpush3.bf16.msra.mxu0 %v612_v2  ;;  %460 = vmatpush3.bf16.msra.mxu1 %v624_v4  ;;  %v299_v28 = vld [vmem:[%s736_s2] sm:$0xf] }
   0x8   :  { %477 = vmatprep.subr.bf16.mxu0 %v545_v0  ;;  %461 = vmatprep.subr.bf16.mxu1 %v545_v0  ;;  %v402_v29 = vld [vmem:[%s737_s6] ss:$0 sm:$0xff] }
   0xa   :  { %454 = vmatmul.mubr.msk.bf16.vlgmr.msra.gmra.mxu0 %vm71_vm1, %v52_v5 }
   0xb   :  { %478 = vmatpush3.bf16.msra.mxu0 %v601_v1  ;;  %481 = vmatprep.mubr.msk.bf16.mxu0 %vm546_vm0, %v545_v0 }
   0xc   :  { %479 = vmatprep.subr.bf16.mxu0 %v545_v0  ;;  %462 = vmatpush3.bf16.msra.mxu1 %v635_v6 }
   0xd   :  { %463 = vmatprep.subr.bf16.mxu1 %v545_v0 }
   0xf   :  { %480 = vmatpush3.bf16.msra.mxu0 %v612_v2 }
  0x10   :  { %485 = vmatprep.subr.bf16.mxu0 %v545_v0  ;;  %464 = vmatpush3.bf16.msra.mxu1 %v648_v7 }
  0x11   :  { %465 = vmatprep.subr.bf16.mxu1 %v545_v0 }
  0x12   :  { %482 = vmatmul.mubr.msk.bf16.vlgmr.msra.gmra.mxu0 %vm71_vm1, %v212_v8 }
  0x13   :  { %486 = vmatpush3.bf16.msra.mxu0 %v618_v3  ;;  %501 = vmatprep.mubr.msk.bf16.mxu0 %vm546_vm0, %v545_v0 }
  0x14   :  { %487 = vmatprep.subr.bf16.mxu0 %v545_v0  ;;  %466 = vmatpush3.bf16.msra.mxu1 %v661_v9 }
  0x15   :  { %467 = vmatprep.subr.bf16.mxu1 %v545_v0 }
  0x17   :  { %488 = vmatpush3.bf16.msra.mxu0 %v624_v4 }
  0x18   :  { %489 = vmatprep.subr.bf16.mxu0 %v545_v0  ;;  %468 = vmatpush3.bf16.msra.mxu1 %v542_v10 }
  0x19   :  { %469 = vmatprep.subr.bf16.mxu1 %v545_v0 }
  0x1b   :  { %490 = vmatpush3.bf16.msra.mxu0 %v635_v6 }
  0x1c   :  { %491 = vmatprep.subr.bf16.mxu0 %v545_v0  ;;  %470 = vmatpush3.bf16.msra.mxu1 %v543_v11 }
  0x1d   :  { %471 = vmatprep.subr.bf16.mxu1 %v545_v0 }
  0x1f   :  { %492 = vmatpush3.bf16.msra.mxu0 %v648_v7 }
  0x20   :  { %493 = vmatprep.subr.bf16.mxu0 %v545_v0  ;;  %472 = vmatpush3.bf16.msra.mxu1 %v544_v12 }
  0x21   :  { %513 = vmatprep.subr.bf16.mxu1 %v545_v0 }
  0x23   :  { %494 = vmatpush3.bf16.msra.mxu0 %v661_v9 }
  0x24   :  { %495 = vmatprep.subr.bf16.mxu0 %v545_v0 }
  0x27   :  { %496 = vmatpush3.bf16.msra.mxu0 %v542_v10 }
  0x28   :  { %497 = vmatprep.subr.bf16.mxu0 %v545_v0 }
  0x2b   :  { %498 = vmatpush3.bf16.msra.mxu0 %v543_v11 }
  0x2c   :  { %499 = vmatprep.subr.bf16.mxu0 %v545_v0 }
  0x2f   :  { %500 = vmatpush3.bf16.msra.mxu0 %v544_v12 }
  0x30   :  { %505 = vmatprep.subr.bf16.mxu0 %v545_v0 }
  0xca   :  { %v109_v14 = vpop.f32.mrf.mxu0 }
  0xcb   :  { %v110_v15 = vadd.f32 %v398_v13, %v109_v14 }
  0xcc   :  { %v455_v16 = vpop.f32.mrf.mxu0 }
  0xcd   :  { %v115_v17 = vmax.f32 %v110_v15, 0.0 }
  0xce   :  { %v112_v18 = vpop.f32.mrf.mxu0 }
  0xcf   :  { %v116_v19 = vpack.c.bf16 %v115_v17, %v115_v17 }
  0xd0   :  { %v456_v20 = vpop.f32.mrf.mxu0 }
  0xd1   :  { %474 = vmatmul.mubr.bf16.vlgmr.msra.gmra.mxu1 %v116_v19 }
  0xd2   :  { %v250_v21 = vpop.f32.mrf.mxu0  ;;  %514 = vmatpush3.bf16.msra.mxu1 %v618_v3  ;;  %529 = vmatprep.mubr.msk.bf16.mxu1 %vm546_vm0, %v545_v0 }
  0xd3   :  { %v251_v22 = vadd.f32 %v398_v13, %v250_v21  ;;  %515 = vmatprep.subr.bf16.mxu1 %v545_v0 }
  0xd4   :  { %v483_v23 = vpop.f32.mrf.mxu0 }
  0xd5   :  { %v256_v24 = vmax.f32 %v251_v22, 0.0 }
  0xd6   :  { %v253_v25 = vpop.f32.mrf.mxu0  ;;  %516 = vmatpush3.bf16.msra.mxu1 %v624_v4 }
  0xd7   :  { %v257_v26 = vpack.c.bf16 %v256_v24, %v256_v24  ;;  %517 = vmatprep.subr.bf16.mxu1 %v545_v0 }
  0xd8   :  { %v484_v27 = vpop.f32.mrf.mxu0 }
  0xd9   :  { %502 = vmatmul.mubr.bf16.vlgmr.msra.gmra.mxu0 %v257_v26 }
  0xda   :  { %506 = vmatpush3.bf16.msra.mxu0 %v601_v1  ;;  %509 = vmatprep.mubr.msk.bf16.mxu0 %vm546_vm0, %v545_v0 }
  0xdb   :  { %507 = vmatprep.subr.bf16.mxu0 %v545_v0  ;;  %518 = vmatpush3.bf16.msra.mxu1 %v635_v6 }
  0xdc   :  { %519 = vmatprep.subr.bf16.mxu1 %v545_v0 }
  0xde   :  { %508 = vmatpush3.bf16.msra.mxu0 %v612_v2 }
  0xdf   :  { %520 = vmatpush3.bf16.msra.mxu1 %v648_v7 }
  0xe0   :  { %521 = vmatprep.subr.bf16.mxu1 %v545_v0 }
  0xe1   :  { %510 = vmatmul.mubr.msk.bf16.vlgmr.msra.gmra.mxu0 %vm71_vm1, %v299_v28 }
  0xe3   :  { %522 = vmatpush3.bf16.msra.mxu1 %v661_v9 }
  0xe4   :  { %523 = vmatprep.subr.bf16.mxu1 %v545_v0 }
  0xe7   :  { %524 = vmatpush3.bf16.msra.mxu1 %v542_v10 }
  0xe8   :  { %525 = vmatprep.subr.bf16.mxu1 %v545_v0 }
  0xeb   :  { %526 = vmatpush3.bf16.msra.mxu1 %v543_v11 }
  0xec   :  { %527 = vmatprep.subr.bf16.mxu1 %v545_v0 }
  0xef   :  { %528 = vmatpush3.bf16.msra.mxu1 %v544_v12 }
 0x191   :  { %v205_v30 = vpop.f32.mrf.mxu1 }
 0x192   :  { %v206_v31 = vadd.f32 %v402_v29, %v205_v30 }
 0x193   :  { %v475_v32 = vpop.f32.mrf.mxu1 }
 0x194   :  { %211 = vst [vmem:[%s738_s7] sm:$0xff] %v206_v31 }
 0x195   :  { %v208_v33 = vpop.f32.mrf.mxu1 }
 0x197   :  { %v476_v34 = vpop.f32.mrf.mxu1 }
 0x199   :  { %v292_v35 = vpop.f32.mrf.mxu0 }
 0x19a   :  { %v293_v36 = vadd.f32 %v402_v29, %v292_v35 }
 0x19b   :  { %v503_v37 = vpop.f32.mrf.mxu0 }
 0x19c   :  { %298 = vst [vmem:[%s739_s8] sm:$0xff] %v293_v36 }
 0x19d   :  { %v295_v38 = vpop.f32.mrf.mxu0 }
 0x19f   :  { %v504_v39 = vpop.f32.mrf.mxu0 }
 0x1a1   :  { %v337_v40 = vpop.f32.mrf.mxu0 }
 0x1a2   :  { %v338_v41 = vadd.f32 %v398_v13, %v337_v40 }
 0x1a3   :  { %v511_v42 = vpop.f32.mrf.mxu0 }
 0x1a4   :  { %v343_v43 = vmax.f32 %v338_v41, 0.0 }
 0x1a5   :  { %v340_v44 = vpop.f32.mrf.mxu0 }
 0x1a6   :  { %v344_v45 = vpack.c.bf16 %v343_v43, %v343_v43 }
 0x1a7   :  { %v512_v46 = vpop.f32.mrf.mxu0 }
 0x1a8   :  { %530 = vmatmul.mubr.bf16.vlgmr.msra.gmra.mxu1 %v344_v45 }
 0x268   :  { %v379_v47 = vpop.f32.mrf.mxu1 }
 0x269   :  { %v380_v48 = vadd.f32 %v402_v29, %v379_v47 }
 0x26a   :  { %v531_v49 = vpop.f32.mrf.mxu1 }
 0x26b   :  { %385 = vst [vmem:[%s740_s9] sm:$0xff] %v380_v48 }
 0x26c   :  { %v382_v50 = vpop.f32.mrf.mxu1 }
 0x26e   :  { %v532_v51 = vpop.f32.mrf.mxu1 }

</bundles_post_ra>
